<compile_context>
chip_gen: v5e
topology: v5e:2x2
jax: 0.10.0
libtpu: 0.0.40
codegen_flags: <defaults>
</compile_context>

<pallas_src>
import functools

import jax
import jax.numpy as jnp
from jax import lax
from jax.experimental import pallas as pl
from jax.experimental.pallas import tpu as pltpu


def _bilinear_decoder_kernel(hd_ref, hm_ref, w_ref, o_ref):
    # hd_ref, hm_ref: (TN, F) bf16;  w_ref: (F, F) bf16;  o_ref: (1, TN) f32
    f = hd_ref.shape[1]

    # (TN, F) @ (F, F) on the MXU, bf16 inputs / f32 accumulation.
    hd0 = jnp.dot(hd_ref[...], w_ref[...], preferred_element_type=jnp.float32)

    # Elementwise product in f32 on the VPU.
    prod = hd0 * hm_ref[...].astype(jnp.float32)              # (TN, F)

    # Per-pair reduction over F, produced lane-dense as a (1, TN) row:
    #   s[0, i] = sum_j ones[0, j] * prod[i, j]
    # (transposed-RHS contraction on the MXU -> result is already lane-major).
    ones_row = jnp.ones((1, f), dtype=jnp.float32)
    s_row = lax.dot_general(
        ones_row, prod,
        dimension_numbers=(((1,), (1,)), ((), ())),
        preferred_element_type=jnp.float32)                    # (1, TN)

    o_ref[...] = jax.nn.sigmoid(s_row)                         # EUP


def _round_up(x, m):
    return (x + m - 1) // m * m


@functools.partial(jax.jit, static_argnames=("block_rows",))
def bilinear_decoder(h_diseases, h_mirnas, W, *, block_rows=1024):
    """sigmoid(((h_diseases @ W) * h_mirnas).sum(axis=1)) as one Pallas kernel."""
    N, F = h_diseases.shape
    assert h_mirnas.shape == (N, F)
    assert W.shape == (F, F)
    assert block_rows % 128 == 0, "block_rows must be a multiple of 128"

    # bf16 inputs for HBM bandwidth; f32 accumulation inside the kernel.
    hd = h_diseases.astype(jnp.bfloat16)
    hm = h_mirnas.astype(jnp.bfloat16)
    w = W.astype(jnp.bfloat16)

    # Row-tile size: big pipelined tiles when N is large, single tile otherwise.
    if N > block_rows:
        tn = block_rows
    else:
        tn = max(8, _round_up(N, 8))
    n_pad = _round_up(N, tn)
    if n_pad != N:
        pad = ((0, n_pad - N), (0, 0))
        hd = jnp.pad(hd, pad)
        hm = jnp.pad(hm, pad)
    grid = (n_pad // tn,)

    cost = pl.CostEstimate(
        flops=2 * n_pad * F * F + 2 * n_pad * F,
        transcendentals=n_pad,
        bytes_accessed=2 * n_pad * F * 2 + F * F * 2 + n_pad * 4,
    )

    out = pl.pallas_call(
        _bilinear_decoder_kernel,
        out_shape=jax.ShapeDtypeStruct((1, n_pad), jnp.float32),
        grid_spec=pl.GridSpec(
            grid=grid,
            in_specs=[
                pl.BlockSpec((tn, F), lambda i: (i, 0)),    # h_diseases tile
                pl.BlockSpec((tn, F), lambda i: (i, 0)),    # h_mirnas tile
                pl.BlockSpec((F, F), lambda i: (0, 0)),     # W, VMEM-resident
            ],
            out_specs=pl.BlockSpec((1, tn), lambda i: (0, i)),  # lane-dense row
        ),
        compiler_params=pltpu.CompilerParams(
            dimension_semantics=("parallel",),   # v7x: shard tiles over 2 TCs
            vmem_limit_bytes=32 * 1024 * 1024,
        ),
        cost_estimate=cost,
    )(hd, hm, w)

    return out.reshape(-1)[:N]


if __name__ == "__main__":
    key = jax.random.PRNGKey(0)
    k_w, k_d, k_m = jax.random.split(key, 3)

    feature_size = 32
    n_pairs = 300   # not a multiple of the 128-row tile -> exercises padding

    # Deterministic parameter init (mirrors torch.randn(feature_size, feature_size)).
    W = jax.random.normal(k_w, (feature_size, feature_size), dtype=jnp.float32)
    h_diseases = jax.random.normal(k_d, (n_pairs, feature_size), dtype=jnp.float32)
    h_mirnas = jax.random.normal(k_m, (n_pairs, feature_size), dtype=jnp.float32)

    # Multi-tile path (grid of 3 row tiles of 128, last tile padded).
    out = bilinear_decoder(h_diseases, h_mirnas, W, block_rows=128)
    out = jax.block_until_ready(out)
    assert out.shape == (n_pairs,)

    # Matched-precision reference (bf16 inputs, f32 accumulation) -> tight check.
    hd_bf = h_diseases.astype(jnp.bfloat16)
    hm_bf = h_mirnas.astype(jnp.bfloat16)
    w_bf = W.astype(jnp.bfloat16)
    ref_bf = jax.nn.sigmoid(jnp.sum(
        jnp.dot(hd_bf, w_bf, preferred_element_type=jnp.float32)
        * hm_bf.astype(jnp.float32), axis=1))
    assert jnp.allclose(out, ref_bf, atol=1e-2, rtol=1e-2)

    # Loose sanity check vs the full-f32 PyTorch-equivalent forward
    # (bf16 input rounding requires a looser tolerance than f32-vs-f32).
    ref_f32 = jax.nn.sigmoid(jnp.sum((h_diseases @ W) * h_mirnas, axis=1))
    assert jnp.allclose(out, ref_f32, atol=0.15, rtol=0.0)

    # Single-tile path (small N, default block size) also works.
    out_small = bilinear_decoder(h_diseases[:8], h_mirnas[:8], W)
    out_small = jax.block_until_ready(out_small)
    assert out_small.shape == (8,)
    assert jnp.allclose(out_small, ref_bf[:8], atol=1e-2, rtol=1e-2)

    print("KERNEL_OK")
</pallas_src>

<mosaic_0001>
module attributes {stable_mosaic.version = 11 : i64} {
  func.func @_bilinear_decoder_kernel(%arg0: i32, %arg1: memref<128x32xbf16, #tpu.memory_space<vmem>>, %arg2: memref<128x32xbf16, #tpu.memory_space<vmem>>, %arg3: memref<32x32xbf16, #tpu.memory_space<vmem>>, %arg4: memref<1x128xf32, #tpu.memory_space<vmem>>) attributes {dimension_semantics = [#tpu.dimension_semantics<parallel>], iteration_bounds = array<i64: 3>, scalar_prefetch = 0 : i64, scratch_operands = 0 : i64, tpu.core_type = #tpu.core_type<tc>, window_params = [{transform_indices = @transform_0, window_bounds = array<i64: 128, 32>}, {transform_indices = @transform_1, window_bounds = array<i64: 128, 32>}, {pipeline_mode = #tpu.pipeline_mode<synchronous>, transform_indices = @transform_2, window_bounds = array<i64: 32, 32>}, {transform_indices = @transform_3, window_bounds = array<i64: 1, 128>}]} {
    %c0 = arith.constant 0 : index
    %c0_0 = arith.constant 0 : index
    %0 = vector.load %arg1[%c0, %c0_0] : memref<128x32xbf16, #tpu.memory_space<vmem>>, vector<128x32xbf16>
    %c0_1 = arith.constant 0 : index
    %c0_2 = arith.constant 0 : index
    %1 = vector.load %arg3[%c0_1, %c0_2] : memref<32x32xbf16, #tpu.memory_space<vmem>>, vector<32x32xbf16>
    %cst = arith.constant dense<0.000000e+00> : vector<128x32xf32>
    %2 = tpu.matmul %0, %1, %cst {dimension_numbers = #tpu.dot_dimension_numbers<[1], [0], [0], [1], [0, 0, 1, 1], [], []>} : vector<128x32xbf16>, vector<32x32xbf16>, vector<128x32xf32> -> vector<128x32xf32>
    %c0_3 = arith.constant 0 : index
    %c0_4 = arith.constant 0 : index
    %3 = vector.load %arg2[%c0_3, %c0_4] : memref<128x32xbf16, #tpu.memory_space<vmem>>, vector<128x32xbf16>
    %4 = arith.extf %3 : vector<128x32xbf16> to vector<128x32xf32>
    %5 = arith.mulf %2, %4 : vector<128x32xf32>
    %cst_5 = arith.constant 1.000000e+00 : f32
    %6 = vector.broadcast %cst_5 : f32 to vector<1x32xf32>
    %cst_6 = arith.constant dense<0.000000e+00> : vector<1x128xf32>
    %7 = tpu.matmul %6, %5, %cst_6 {dimension_numbers = #tpu.dot_dimension_numbers<[1], [1], [0], [0], [0, 0, 1, 0], [], []>} : vector<1x32xf32>, vector<128x32xf32>, vector<1x128xf32> -> vector<1x128xf32>
    %8 = arith.negf %7 : vector<1x128xf32>
    %9 = math.exp %8 : vector<1x128xf32>
    %cst_7 = arith.constant 1.000000e+00 : f32
    %10 = vector.broadcast %cst_7 : f32 to vector<1x128xf32>
    %11 = arith.addf %10, %9 : vector<1x128xf32>
    %12 = arith.divf %10, %11 : vector<1x128xf32>
    %c0_8 = arith.constant 0 : index
    %c0_9 = arith.constant 0 : index
    %13 = vector.load %arg4[%c0_8, %c0_9] : memref<1x128xf32, #tpu.memory_space<vmem>>, vector<1x128xf32>
    tpu.vector_store %arg4[%c0_8, %c0_9], %12 {strides = array<i32>} : memref<1x128xf32, #tpu.memory_space<vmem>>, vector<1x128xf32>,
    return
  }
  func.func @transform_0(%arg0: i32) -> (i32, i32) {
    %c0_i32 = arith.constant 0 : i32
    %c0_i32_0 = arith.constant 0 : i32
    return %arg0, %c0_i32 : i32, i32
  }
  func.func @transform_1(%arg0: i32) -> (i32, i32) {
    %c0_i32 = arith.constant 0 : i32
    %c0_i32_0 = arith.constant 0 : i32
    return %arg0, %c0_i32 : i32, i32
  }
  func.func @transform_2(%arg0: i32) -> (i32, i32) {
    %c0_i32 = arith.constant 0 : i32
    %c0_i32_0 = arith.constant 0 : i32
    %c0_i32_1 = arith.constant 0 : i32
    return %c0_i32, %c0_i32_0 : i32, i32
  }
  func.func @transform_3(%arg0: i32) -> (i32, i32) {
    %c0_i32 = arith.constant 0 : i32
    %c0_i32_0 = arith.constant 0 : i32
    return %c0_i32, %arg0 : i32, i32
  }
}

</mosaic_0001>

<bundles_post_ra>
// kernel: bilinear_decoder.1
= control target key start
LH: loop header
LB: loop body
LE: loop exit
PB: predicated region body
PF: predicated region fallthrough
CT: control target
= control target key end

     0   :  { %s708_s12 = smov 0   ;;  %s784_s0 = inlined_call_operand.vmem [shape: bf16[384,32], index: 0, kind: input, shape index: {}]   ;;  %s785_s1 = inlined_call_operand.vmem [shape: bf16[384,32], index: 1, kind: input, shape index: {}]   ;;  %s786_s2 = inlined_call_operand.vmem [shape: bf16[32,32], index: 2, kind: input, shape index: {}]   ;;  %s787_s3 = inlined_call_operand.vmem [shape: f32[1,384], index: 3, kind: output, shape index: {}]  }
   0x1 LB: > { %s714_s13 = sadd.s32 4294967295, %s685_s12   ;;  %p540_p0 = scmp.ge.s32.totalorder %s685_s12, 1  ;;  %s685_s12 = sphi %s708_s12, %s13_s12  }
   0x2   : > { %p149_p1 = scmp.lt.s32.totalorder %s685_s12, 4 }
   0x4   : > { %p150_p2 = pnand %p540_p0, %p149_p1 }
   0x5   : > { %s541_s16 = sshll.u32 (!%p150_p2), %s714_s13, 4  ;;  %p188_p4 = scmp.lt.s32.totalorder (!%p150_p2), %s714_s13, 2 }
   0x6   : > { %153 = sbr.rel (%p150_p2) target bundleno = 395 (0x18b), region = 32  ;;  %p177_p3 = scmp.lt.s32.totalorder (!%p150_p2), %s541_s16, 47 }
   0xb   : > { %v622_v0 = vld [vmem:[%s786_s2 + $0x8] sm:$0xff]  ;;  %v621_v1 = vld [vmem:[%s786_s2] sm:$0xff]  ;;  %s789_s16 = smov (!%p177_p3, %s541_s16), 47  ;;  %vm264_vm0 = vcmask 261120   ;;  %s791_s13 = smov (!%p188_p4, %s714_s13), 2 }
   0xc   : > { %662 = vmatpush.bf16.msra.mxu2 %v622_v0  ;;  %663 = vmatpush.bf16.msra.mxu3 %v622_v0  ;;  %s542_s19 = sshll.u32 %s789_s16, 2  ;;  %s190_s28 = scalar_lea.vmem %s787_s3, %s791_s13 }
   0xd   : > { %295 = vmatpush.bf16.msra.mxu0 %v622_v0  ;;  %s180_s22 = scalar_lea.vmem %s784_s0, %s542_s19  ;;  %s748_s25 = scalar_lea.vmem %s785_s1, %s542_s19 }
   0xe   : > { %v616_v2 = vld [vmem:[%s180_s22 + $0x18] sm:$0xff]  ;;  %v619_v3 = vld [vmem:[%s180_s22 + $0x30] sm:$0xff]  ;;  %v613_v4 = vld [vmem:[%s180_s22] sm:$0xff] }
   0xf   : > { %v617_v5 = vld [vmem:[%s180_s22 + $0x20] sm:$0xff]  ;;  %v620_v6 = vld [vmem:[%s180_s22 + $0x38] sm:$0xff]  ;;  %v614_v7 = vld [vmem:[%s180_s22 + $0x8] sm:$0xff] }
  0x10   : > { %664 = vmatpush.bf16.msra.mxu2 %v621_v1  ;;  %665 = vmatpush.bf16.msra.mxu3 %v621_v1  ;;  %v618_v8 = vld [vmem:[%s180_s22 + $0x28] sm:$0xff]  ;;  %v615_v9 = vld [vmem:[%s180_s22 + $0x10] sm:$0xff]  ;;  %v661_v17 = vld [vmem:[%s748_s25 + $0x38] sm:$0xff]  }
  0x11   : > { %296 = vmatpush.bf16.msra.mxu0 %v621_v1  ;;  %v654_v18 = vunpack.c.h.bf16 %v661_v17  ;;  %v653_v22 = vunpack.c.l.bf16 %v661_v17  ;;  %v660_v24 = vld [vmem:[%s748_s25 + $0x30] sm:$0xff]   ;;  %v659_v31 = vld [vmem:[%s748_s25 + $0x28] sm:$0xff]   ;;  %v658_v38 = vld [vmem:[%s748_s25 + $0x20] sm:$0xff]  }
  0x12   : > { %v650_v25 = vunpack.c.h.bf16 %v660_v24  ;;  %v649_v29 = vunpack.c.l.bf16 %v660_v24  ;;  %v646_v33 = vunpack.c.h.bf16 %v659_v31  ;;  %v645_v35 = vunpack.c.l.bf16 %v659_v31  ;;  %v657_v43 = vld [vmem:[%s748_s25 + $0x18] sm:$0xff]   ;;  %v656_v49 = vld [vmem:[%s748_s25 + $0x10] sm:$0xff]   ;;  %v655_v55 = vld [vmem:[%s748_s25 + $0x8] sm:$0xff]  }
  0x13   : > { %588 = vmatmul.msk.bf16.vlgmr.msra.gmra.mxu2 %vm264_vm0, %v616_v2  ;;  %591 = vmatmul.msk.bf16.vlgmr.msra.gmra.mxu3 %vm264_vm0, %v619_v3  ;;  %v642_v39 = vunpack.c.h.bf16 %v658_v38  ;;  %v641_v41 = vunpack.c.l.bf16 %v658_v38  ;;  %v638_v45 = vunpack.c.h.bf16 %v657_v43  ;;  %v637_v47 = vunpack.c.l.bf16 %v657_v43  ;;  %v624_v60 = vld [vmem:[%s748_s25] sm:$0xff]  }
  0x14   : > { %585 = vmatmul.msk.bf16.vlgmr.msra.gmra.mxu0 %vm264_vm0, %v613_v4  ;;  %v634_v51 = vunpack.c.h.bf16 %v656_v49  ;;  %v633_v53 = vunpack.c.l.bf16 %v656_v49  ;;  %v630_v56 = vunpack.c.h.bf16 %v655_v55  ;;  %v629_v58 = vunpack.c.l.bf16 %v655_v55 }
  0x15   : > { %v626_v61 = vunpack.c.h.bf16 %v624_v60  ;;  %v625_v63 = vunpack.c.l.bf16 %v624_v60  ;;  %v687_v2 = vmov 1.0  }
  0x23   : > { %589 = vmatmul.msk.bf16.gmra.mxu2 %vm264_vm0, %v617_v5  ;;  %592 = vmatmul.msk.bf16.gmra.mxu3 %vm264_vm0, %v620_v6 }
  0x24   : > { %586 = vmatmul.msk.bf16.gmra.mxu0 %vm264_vm0, %v614_v7 }
  0x33   : > { %590 = vmatmul.msk.bf16.gmra.mxu2 %vm264_vm0, %v618_v8 }
  0x34   : > { %587 = vmatmul.msk.bf16.gmra.mxu0 %vm264_vm0, %v615_v9 }
  0x91   : > { %v741_v14 = vpop.f32.mrf.mxu0 }
  0x92   : > { %v370_v1 = vmul.f32 %v625_v63, %v741_v14 }
  0x96   : > { %v313_v10 = vpop.f32.mrf.mxu2  ;;  %v328_v11 = vpop.f32.mrf.mxu3 }
  0x97   : > { %v382_v32 = vmul.f32 %v649_v29, %v328_v11  ;;  %v376_v50 = vmul.f32 %v637_v47, %v313_v10 }
  0x99   : > { %v300_v19 = vpop.f32.mrf.mxu0 }
  0x9a   : > { %v371_v0 = vmul.f32 %v626_v61, %v300_v19 }
  0x9e   : > { %v315_v12 = vpop.f32.mrf.mxu2  ;;  %v330_v13 = vpop.f32.mrf.mxu3 }
  0x9f   : > { %v383_v30 = vmul.f32 %v650_v25, %v330_v13  ;;  %v377_v48 = vmul.f32 %v638_v45, %v315_v12 }
  0xa1   : > { %v303_v27 = vpop.f32.mrf.mxu0 }
  0xa2   : > { %v372_v62 = vmul.f32 %v629_v58, %v303_v27 }
  0xa6   : > { %v318_v15 = vpop.f32.mrf.mxu2  ;;  %v333_v16 = vpop.f32.mrf.mxu3 }
  0xa7   : > { %v384_v26 = vmul.f32 %v653_v22, %v333_v16  ;;  %v378_v46 = vmul.f32 %v641_v41, %v318_v15 }
  0xa9   : > { %v305_v37 = vpop.f32.mrf.mxu0 }
  0xaa   : > { %v373_v59 = vmul.f32 %v630_v56, %v305_v37 }
  0xae   : > { %v320_v20 = vpop.f32.mrf.mxu2  ;;  %v335_v21 = vpop.f32.mrf.mxu3 }
  0xaf   : > { %v385_v23 = vmul.f32 %v654_v18, %v335_v21  ;;  %v379_v42 = vmul.f32 %v642_v39, %v320_v20 }
  0xb1   : > { %593 = vmatpush.xpose.msk.msra.mxu1 %vm264_vm0, %v385_v23  ;;  %v308_v44 = vpop.f32.mrf.mxu0 }
  0xb2   : > { %v374_v57 = vmul.f32 %v633_v53, %v308_v44 }
  0xb5   : > { %594 = vmatpush.xpose.msk.msra.mxu1 %vm264_vm0, %v384_v26 }
  0xb6   : > { %v323_v28 = vpop.f32.mrf.mxu2 }
  0xb7   : > { %v380_v40 = vmul.f32 %v645_v35, %v323_v28 }
  0xb9   : > { %595 = vmatpush.xpose.msk.msra.mxu1 %vm264_vm0, %v383_v30  ;;  %v310_v52 = vpop.f32.mrf.mxu0 }
  0xba   : > { %v375_v54 = vmul.f32 %v634_v51, %v310_v52 }
  0xbd   : > { %596 = vmatpush.xpose.msk.msra.mxu1 %vm264_vm0, %v382_v32 }
  0xbe   : > { %v325_v34 = vpop.f32.mrf.mxu2 }
  0xbf   : > { %v381_v36 = vmul.f32 %v646_v33, %v325_v34 }
  0xc1   : > { %597 = vmatpush.xpose.msk.msra.mxu1 %vm264_vm0, %v381_v36 }
  0xc5   : > { %598 = vmatpush.xpose.msk.msra.mxu1 %vm264_vm0, %v380_v40 }
  0xc9   : > { %599 = vmatpush.xpose.msk.msra.mxu1 %vm264_vm0, %v379_v42 }
  0xcd   : > { %600 = vmatpush.xpose.msk.msra.mxu1 %vm264_vm0, %v378_v46 }
  0xd1   : > { %601 = vmatpush.xpose.msk.msra.mxu1 %vm264_vm0, %v377_v48 }
  0xd5   : > { %602 = vmatpush.xpose.msk.msra.mxu1 %vm264_vm0, %v376_v50 }
  0xd9   : > { %603 = vmatpush.xpose.msk.msra.mxu1 %vm264_vm0, %v375_v54 }
  0xdd   : > { %604 = vmatpush.xpose.msk.msra.mxu1 %vm264_vm0, %v374_v57 }
  0xe1   : > { %605 = vmatpush.xpose.msk.msra.mxu1 %vm264_vm0, %v373_v59 }
  0xe5   : > { %606 = vmatpush.xpose.msk.msra.mxu1 %vm264_vm0, %v372_v62 }
  0xe9   : > { %607 = vmatpush.xpose.msk.msra.mxu1 %vm264_vm0, %v371_v0 }
  0xed   : > { %608 = vmatpush.xpose.msk.msra.mxu1 %vm264_vm0, %v370_v1 }
  0xf0   : > { %609 = vmatmul.msk.f32.vlgmr.msra.gmra.mxu1 %vm264_vm0, %v687_v2 }
 0x16d   : > { %v454_v3 = vpop.f32.mrf.mxu1 }
 0x16e   : > { %v610_v4 = vmul.f32 -1.442695, %v454_v3 }
 0x170   : > { %675 = vpow2.f32 %v610_v4 }
 0x176   : > { %v676_v5 = vpop.eup %675 }
 0x177   : > { %v460_v6 = vadd.f32 1.0, %v676_v5 }
 0x179   : > { %677 = vrcp.f32 %v460_v6  ;;  %v472_v10 = vand.u32 2147483648, %v460_v6  ;;  %v470_v12 = vand.u32 2147483647, %v460_v6  ;;  %vm466_vm2 = vweird.f32 %v460_v6 }
 0x17b   : > { %v473_v14 = vor.u32 1.1754944e-38, %v472_v10  ;;  %vm471_vm4 = vcmp.eq.f32.partialorder %v470_v12, 8.507059e+37 }
 0x17f   : > { %v678_v7 = vpop.eup %677 }
 0x180   : > { %v462_v8 = vmul.f32 %v678_v7, %v460_v6  ;;  %vm467_vm1 = vweird.f32 %v678_v7 }
 0x181   : > { %vm468_vm3 = vmor %vm466_vm2, %vm467_vm1 }
 0x182   : > { %v463_v9 = vsub.f32 1.0, %v462_v8 }
 0x184   : > { %v464_v11 = vmul.f32 %v678_v7, %v463_v9 }
 0x186   : > { %v465_v13 = vadd.f32 %v678_v7, %v464_v11 }
 0x188   : > { %v469_v15 = vsel %vm468_vm3, %v678_v7, %v465_v13 }
 0x189   : > { %v474_v16 = vsel %vm471_vm4, %v473_v14, %v469_v15 }
 0x18a   : > { %476 = vst [vmem:[%s190_s28] sm:$0x1] %v474_v16 }
 0x18b PF: > { %s13_s12 = sadd.s32 1, %s685_s12  }
 0x18c   : > { %p10_p5 = scmp.ge.s32.totalorder %s13_s12, 5  }
 0x18e   :  { %12 = sbr.rel (!%p10_p5) target bundleno = 1 (0x1), region = 65 }

</bundles_post_ra>
